<compile_context>
chip_gen: v6e
topology: v6e:2x2x1
jax: 0.10.0
libtpu: 0.0.40
codegen_flags: <defaults>
</compile_context>

<pallas_src>
import numpy as np
import jax
import jax.numpy as jnp
from jax.experimental import pallas as pl
from jax.experimental.pallas import tpu as pltpu

VMEM_LIMIT = 32 * 1024 * 1024     # within every generation's scoped default
BN_EPS = 1e-5


def _round_up(x, m):
    return -(-x // m) * m


def _largest_tile(dim, cap, align):
    """Largest multiple of `align` that is <= cap and divides `dim`
    (dim is assumed to be a multiple of `align`)."""
    t = max(align, (cap // align) * align)
    while dim % t != 0:
        t -= align
    return t


# -------------- fused conv matmul + BatchNorm statistics ----------------

def _matmul_stats_kernel(a_ref, b_ref, o_ref, sum_ref, sq_ref, acc_ref):
    # grid = (j: N tiles, i: M tiles, k: K tiles); stats blocks (0, j) stay
    # resident in VMEM across the whole (i, k) sweep for a given j.
    i = pl.program_id(1)
    k = pl.program_id(2)

    @pl.when(jnp.logical_and(i == 0, k == 0))
    def _():                                   # first visit of this stat tile
        sum_ref[...] = jnp.zeros_like(sum_ref)
        sq_ref[...] = jnp.zeros_like(sq_ref)

    @pl.when(k == 0)
    def _():
        acc_ref[...] = jnp.zeros_like(acc_ref)

    acc_ref[...] += jnp.dot(a_ref[...], b_ref[...],
                            preferred_element_type=jnp.float32)

    @pl.when(k == pl.num_programs(2) - 1)
    def _():
        acc = acc_ref[...]
        o_ref[...] = acc.astype(o_ref.dtype)
        sum_ref[...] += jnp.sum(acc, axis=0, keepdims=True)
        sq_ref[...] += jnp.sum(acc * acc, axis=0, keepdims=True)


def conv_matmul_bn_stats(a, b):
    """(M,K) @ (K,N) -> f32 (M,N) plus fused per-channel sum / sumsq.

    bf16 MXU operands, f32 accumulation.  Zero rows/cols introduced by
    alignment padding contribute exactly nothing to the statistics (no conv
    bias), so BN stats divide by the true row count later.
    """
    M, K = a.shape
    K2, N = b.shape
    assert K == K2
    a = a.astype(jnp.bfloat16)
    b = b.astype(jnp.bfloat16)

    # --- adaptive tiles; pad only misaligned dims ---
    Mp = M if M % 8 == 0 else _round_up(M, 8)
    tm = Mp if Mp <= 512 else _largest_tile(Mp, 512, 8)
    Kp = K if K % 128 == 0 else _round_up(K, 128)
    tk = Kp if Kp <= 2048 else _largest_tile(Kp, 2048, 128)
    if N <= 512:                       # small N: full-extent (lane) block
        Np, tn = N, N
    else:
        Np = N if N % 128 == 0 else _round_up(N, 128)
        tn = _largest_tile(Np, 512, 128)

    if (Mp, Kp) != (M, K):
        a = jnp.pad(a, ((0, Mp - M), (0, Kp - K)))
    if (Kp, Np) != (K, N):
        b = jnp.pad(b, ((0, Kp - K), (0, Np - N)))

    out, ssum, ssq = pl.pallas_call(
        _matmul_stats_kernel,
        out_shape=(jax.ShapeDtypeStruct((Mp, Np), jnp.float32),
                   jax.ShapeDtypeStruct((1, Np), jnp.float32),
                   jax.ShapeDtypeStruct((1, Np), jnp.float32)),
        grid_spec=pltpu.PrefetchScalarGridSpec(
            num_scalar_prefetch=0,
            grid=(Np // tn, Mp // tm, Kp // tk),       # (j, i, k)
            in_specs=[
                pl.BlockSpec((tm, tk), lambda j, i, k: (i, k)),
                pl.BlockSpec((tk, tn), lambda j, i, k: (k, j)),
            ],
            out_specs=[
                pl.BlockSpec((tm, tn), lambda j, i, k: (i, j)),
                pl.BlockSpec((1, tn), lambda j, i, k: (0, j)),
                pl.BlockSpec((1, tn), lambda j, i, k: (0, j)),
            ],
            scratch_shapes=[pltpu.VMEM((tm, tn), jnp.float32)],
        ),
        compiler_params=pltpu.CompilerParams(
            # i and k both carry resident accumulations -> "arbitrary";
            # distinct j tiles are fully independent -> "parallel".
            dimension_semantics=("parallel", "arbitrary", "arbitrary"),
            vmem_limit_bytes=VMEM_LIMIT),
    )(a, b)

    if (Mp, Np) != (M, N):
        out = out[:M, :N]
        ssum = ssum[:, :N]
        ssq = ssq[:, :N]
    return out, ssum, ssq


# ----------------------- BatchNorm affine + ELU --------------------------

def _affine_elu_kernel(x_ref, scale_ref, shift_ref, o_ref):
    y = x_ref[...] * scale_ref[...] + shift_ref[...]
    y = jnp.where(y > 0, y, jnp.exp(jnp.minimum(y, 0.0)) - 1.0)   # ELU
    o_ref[...] = y.astype(o_ref.dtype)


def bn_elu(y, ssum, ssq, gamma, beta, out_dtype=jnp.bfloat16):
    """Training-mode BatchNorm (batch stats already reduced on-chip) + ELU."""
    M, C = y.shape
    mean = ssum / M
    var = jnp.maximum(ssq / M - mean * mean, 0.0)      # biased (training) var
    scale = gamma.reshape(1, C) * jax.lax.rsqrt(var + BN_EPS)
    shift = beta.reshape(1, C) - mean * scale

    max_tile = max(8, min(512, (2 * 1024 * 1024) // (4 * C)))
    if M <= max_tile:
        Mp, tm = M, M
    else:
        Mp = M if M % 8 == 0 else _round_up(M, 8)
        tm = _largest_tile(Mp, max_tile, 8)
    yp = y if Mp == M else jnp.pad(y, ((0, Mp - M), (0, 0)))

    out = pl.pallas_call(
        _affine_elu_kernel,
        out_shape=jax.ShapeDtypeStruct((Mp, C), out_dtype),
        grid_spec=pltpu.PrefetchScalarGridSpec(
            num_scalar_prefetch=0,
            grid=(Mp // tm,),
            in_specs=[pl.BlockSpec((tm, C), lambda i: (i, 0)),
                      pl.BlockSpec((1, C), lambda i: (0, 0)),
                      pl.BlockSpec((1, C), lambda i: (0, 0))],
            out_specs=pl.BlockSpec((tm, C), lambda i: (i, 0)),
        ),
        compiler_params=pltpu.CompilerParams(
            dimension_semantics=("parallel",),
            vmem_limit_bytes=VMEM_LIMIT),
    )(yp, scale, shift)
    return out if Mp == M else out[:M]


# ------------------------------ conv glue -------------------------------

def _im2col2d(x, k, stride):
    """NHWC im2col: (B,H,W,C) -> (B*OH*OW, k*k*C); column order (dy,dx,c)."""
    p = (k - 1) // 2                  # floor(dilation*(k-1)/2), dilation=1
    if p:
        x = jnp.pad(x, ((0, 0), (p, p), (p, p), (0, 0)))
    B, H, W, C = x.shape
    oh = (H - k) // stride + 1
    ow = (W - k) // stride + 1
    cols = []
    for dy in range(k):
        for dx in range(k):
            cols.append(x[:, dy:dy + stride * (oh - 1) + 1:stride,
                           dx:dx + stride * (ow - 1) + 1:stride, :])
    patches = jnp.concatenate(cols, axis=-1)            # (B, OH, OW, k*k*C)
    return patches.reshape(B * oh * ow, k * k * C), (B, oh, ow)


def _im2col3d(x, k):
    """NDHWC im2col: (B,D,H,W,C) -> (B*OD*OH*OW, k^3*C)."""
    p = (k - 1) // 2
    x = jnp.pad(x, ((0, 0), (p, p), (p, p), (p, p), (0, 0)))
    B, D, H, W, C = x.shape
    od, oh, ow = D - k + 1, H - k + 1, W - k + 1
    cols = []
    for dz in range(k):
        for dy in range(k):
            for dx in range(k):
                cols.append(x[:, dz:dz + od, dy:dy + oh, dx:dx + ow, :])
    patches = jnp.concatenate(cols, axis=-1)
    return patches.reshape(B * od * oh * ow, k ** 3 * C), (B, od, oh, ow)


def conv2d_block(x, p):
    """Conv module: pad -> conv (bias dropped; cancelled by BN) -> BN -> ELU."""
    k, s = p["k"], p["stride"]
    if k == 1:                                  # 1x1: no im2col at all
        xs = x[:, ::s, ::s, :] if s > 1 else x
        B, oh, ow, _ = xs.shape
        patches = xs.reshape(B * oh * ow, -1)
        dims = (B, oh, ow)
    else:
        patches, dims = _im2col2d(x, k, s)
    y, ssum, ssq = conv_matmul_bn_stats(patches, p["wm"])
    y = bn_elu(y, ssum, ssq, p["gamma"], p["beta"])
    B, oh, ow = dims
    return y.reshape(B, oh, ow, -1)


def conv3d_block(x, p):
    patches, (B, od, oh, ow) = _im2col3d(x, p["k"])
    y, ssum, ssq = conv_matmul_bn_stats(patches, p["wm"])
    y = bn_elu(y, ssum, ssq, p["gamma"], p["beta"])
    return y.reshape(B, od, oh, ow, -1)


def resconv(x, p):
    """ResConv: ELU(BN(conv3(conv2(conv1(x))) + conv4(x))).

    conv3 (1x1 on the main path), conv4 (1x1 strided shortcut) and the
    residual add are fused into one matmul over concatenated inputs."""
    s = p["stride"]
    y1 = conv2d_block(x, p["conv1"])            # 1x1, stride 1
    y2 = conv2d_block(y1, p["conv2"])           # kxk, stride s
    xs = x[:, ::s, ::s, :] if s > 1 else x      # conv4's stride = subsample
    B, oh, ow, _ = y2.shape
    a = jnp.concatenate([y2.reshape(B * oh * ow, -1),
                         xs.reshape(B * oh * ow, -1)], axis=-1)
    z, ssum, ssq = conv_matmul_bn_stats(a, p["w34"])   # conv3 + conv4 + add
    z = bn_elu(z, ssum, ssq, p["bn_gamma"], p["bn_beta"])
    return z.reshape(B, oh, ow, -1)


def resblock(x, blocks):
    for blk in blocks:
        x = resconv(x, blk)
    return x


def upconv(x, p):
    x = jnp.repeat(jnp.repeat(x, 2, axis=1), 2, axis=2)   # nearest upsample x2
    return conv2d_block(x, p)


# --------------------------- parameter setup ----------------------------

def _conv2d_wmat(key, cin, cout, k):
    fan_in = cin * k * k
    w = jax.random.normal(key, (cout, cin, k, k), jnp.float32) / np.sqrt(fan_in)
    # matmul layout matching im2col column order (dy, dx, cin); stored bf16
    return jnp.transpose(w, (2, 3, 1, 0)).reshape(k * k * cin, cout).astype(jnp.bfloat16)


def _conv3d_wmat(key, cin, cout, k):
    fan_in = cin * k ** 3
    w = jax.random.normal(key, (cout, cin, k, k, k), jnp.float32) / np.sqrt(fan_in)
    return jnp.transpose(w, (2, 3, 4, 1, 0)).reshape(k ** 3 * cin, cout).astype(jnp.bfloat16)


def _init_conv_block(key, cin, cout, k, stride, is3d=False):
    # NOTE: conv bias omitted -- every conv feeds a training-mode BatchNorm,
    # which exactly cancels any per-channel constant added before it.
    wm = _conv3d_wmat(key, cin, cout, k) if is3d else _conv2d_wmat(key, cin, cout, k)
    return {"wm": wm,
            "gamma": jnp.ones((cout,), jnp.float32),
            "beta": jnp.zeros((cout,), jnp.float32),
            "k": k, "stride": stride}


def _init_resconv(key, cin, cout, stride, ksz=3):
    k1, k2, k3, k4 = jax.random.split(key, 4)
    w3 = _conv2d_wmat(k3, cout, 4 * cout, 1)    # (cout,  4*cout)
    w4 = _conv2d_wmat(k4, cin, 4 * cout, 1)     # (cin,   4*cout)
    return {
        "conv1": _init_conv_block(k1, cin, cout, 1, 1),
        "conv2": _init_conv_block(k2, cout, cout, ksz, stride),
        "w34": jnp.concatenate([w3, w4], axis=0),   # fused conv3/conv4
        "bn_gamma": jnp.ones((4 * cout,), jnp.float32),
        "bn_beta": jnp.zeros((4 * cout,), jnp.float32),
        "stride": stride,
    }


def _init_resblock(key, cin, cout, num_blocks, stride):
    keys = jax.random.split(key, num_blocks)
    blocks = [_init_resconv(keys[0], cin, cout, stride)]
    for i in range(1, num_blocks - 1):
        blocks.append(_init_resconv(keys[i], 4 * cout, cout, 1))
    blocks.append(_init_resconv(keys[num_blocks - 1], 4 * cout, cout, 1))
    return blocks


def init_tbn_params(key, num_in_layers, vol_dim, num_features):
    F = 128   # num_gen_features / encode_feature_scale_factor (hardcoded in TBN)
    ks = jax.random.split(key, 13)
    return {
        "in_conv0": _init_conv_block(ks[0], num_in_layers, F, 4, 2),
        "conv1": _init_conv_block(ks[1], F, 2 * F, 2, 2),
        "conv2_rb": _init_resblock(ks[2], 2 * F, F, 2, 2),
        "conv3_rb": _init_resblock(ks[3], 4 * F, 2 * F, 2, 2),
        "conv4_rb": _init_resblock(ks[4], 8 * F, 4 * F, 2, 2),
        "upconv4": _init_conv_block(ks[5], 16 * F, 8 * F, 3, 1),
        "iconv4": _init_conv_block(ks[6], 16 * F, 8 * F, 3, 1),
        "upconv3": _init_conv_block(ks[7], 8 * F, 4 * F, 3, 1),
        "iconv3": _init_conv_block(ks[8], 8 * F, 4 * F, 3, 1),
        "upconv2": _init_conv_block(ks[9], 4 * F, num_features, 3, 1),
        "iconv2": _init_conv_block(ks[10], 2 * F + num_features, num_features, 3, 1),
        "deconv3d_32_1": _init_conv_block(ks[11], 64, 64, 3, 1, is3d=True),
        "deconv3d_32_4": _init_conv_block(ks[12], 64, 64, 3, 1, is3d=True),
        "vol_dim": vol_dim,
    }


# ------------------------------- encode ---------------------------------

def tbn_encode(params, x_nchw):
    # TODO(synk): TBN.forward() literally returns NULL in the source; encode()
    #             is the real forward pass and is what is implemented here.
    x = jnp.transpose(x_nchw, (0, 2, 3, 1)).astype(jnp.bfloat16)   # NCHW->NHWC
    x = conv2d_block(x, params["in_conv0"])
    x1 = conv2d_block(x, params["conv1"])
    x2 = resblock(x1, params["conv2_rb"])
    x3 = resblock(x2, params["conv3_rb"])
    x4 = resblock(x3, params["conv4_rb"])
    xo = upconv(x4, params["upconv4"])
    xo = jnp.concatenate([xo, x3], axis=-1)
    xo = conv2d_block(xo, params["iconv4"])
    xo = upconv(xo, params["upconv3"])
    xo = jnp.concatenate([xo, x2], axis=-1)
    xo = conv2d_block(xo, params["iconv3"])
    xo = upconv(xo, params["upconv2"])
    xo = jnp.concatenate([xo, x1], axis=-1)
    xo = conv2d_block(xo, params["iconv2"])
    # torch: x.view(B, C//vd, vd, H, W) on NCHW -> NDHWC equivalent here
    B, H, W, C = xo.shape
    vd = params["vol_dim"]
    xo = xo.reshape(B, H, W, C // vd, vd)
    xo = jnp.transpose(xo, (0, 4, 1, 2, 3))                # (B, vd, H, W, C//vd)
    xo = conv3d_block(xo, params["deconv3d_32_1"])
    xo = conv3d_block(xo, params["deconv3d_32_4"])
    return jnp.transpose(xo, (0, 4, 1, 2, 3)).astype(jnp.float32)   # NCDHW


if __name__ == "__main__":
    key = jax.random.PRNGKey(0)
    pkey, xkey = jax.random.split(key)
    # Small config consistent with the module: TBN(num_in_layers=3, vol_dim=8,
    # num_features=512) -> num_features / vol_dim = 64, as the 3D decode convs
    # require.
    params = init_tbn_params(pkey, num_in_layers=3, vol_dim=8, num_features=512)
    x = jax.random.normal(xkey, (2, 3, 32, 32), jnp.float32)

    out = tbn_encode(params, x)
    out = jax.block_until_ready(out)

    assert out.shape == (2, 64, 8, 8, 8), out.shape
    assert bool(jnp.all(jnp.isfinite(out)))
    print("KERNEL_OK")
</pallas_src>

<mosaic_0001>
module attributes {stable_mosaic.version = 11 : i64} {
  func.func @_matmul_stats_kernel(%arg0: i32, %arg1: i32, %arg2: i32, %arg3: memref<512x128xbf16, #tpu.memory_space<vmem>>, %arg4: memref<128x128xbf16, #tpu.memory_space<vmem>>, %arg5: memref<512x128xf32, #tpu.memory_space<vmem>>, %arg6: memref<1x128xf32, #tpu.memory_space<vmem>>, %arg7: memref<1x128xf32, #tpu.memory_space<vmem>>, %arg8: memref<512x128xf32, #tpu.memory_space<vmem>>) attributes {dimension_semantics = [#tpu.dimension_semantics<parallel>, #tpu.dimension_semantics<arbitrary>, #tpu.dimension_semantics<arbitrary>], iteration_bounds = array<i64: 1, 1, 1>, scalar_prefetch = 0 : i64, scratch_operands = 1 : i64, tpu.core_type = #tpu.core_type<tc>, window_params = [{transform_indices = @transform_0, window_bounds = array<i64: 512, 128>}, {transform_indices = @transform_1, window_bounds = array<i64: 128, 128>}, {transform_indices = @transform_2, window_bounds = array<i64: 512, 128>}, {transform_indices = @transform_3, window_bounds = array<i64: 1, 128>}, {transform_indices = @transform_4, window_bounds = array<i64: 1, 128>}]} {
    %c0_i32 = arith.constant 0 : i32
    %0 = arith.cmpi eq, %arg1, %c0_i32 : i32
    %c0_i32_0 = arith.constant 0 : i32
    %1 = arith.cmpi eq, %arg2, %c0_i32_0 : i32
    %2 = arith.andi %0, %1 : i1
    %3 = arith.extui %2 : i1 to i32
    %c0_i32_1 = arith.constant 0 : i32
    %4 = arith.cmpi ne, %3, %c0_i32_1 : i32
    scf.if %4 {
      %cst_13 = arith.constant 0.000000e+00 : f32
      %17 = vector.broadcast %cst_13 : f32 to vector<1x128xf32>
      %c0_14 = arith.constant 0 : index
      %c0_15 = arith.constant 0 : index
      %18 = vector.load %arg6[%c0_14, %c0_15] : memref<1x128xf32, #tpu.memory_space<vmem>>, vector<1x128xf32>
      tpu.vector_store %arg6[%c0_14, %c0_15], %17 {strides = array<i32>} : memref<1x128xf32, #tpu.memory_space<vmem>>, vector<1x128xf32>,
      %cst_16 = arith.constant 0.000000e+00 : f32
      %19 = vector.broadcast %cst_16 : f32 to vector<1x128xf32>
      %c0_17 = arith.constant 0 : index
      %c0_18 = arith.constant 0 : index
      %20 = vector.load %arg7[%c0_17, %c0_18] : memref<1x128xf32, #tpu.memory_space<vmem>>, vector<1x128xf32>
      tpu.vector_store %arg7[%c0_17, %c0_18], %19 {strides = array<i32>} : memref<1x128xf32, #tpu.memory_space<vmem>>, vector<1x128xf32>,
    } else {
    }
    %c0_i32_2 = arith.constant 0 : i32
    %5 = arith.cmpi eq, %arg2, %c0_i32_2 : i32
    %6 = arith.extui %5 : i1 to i32
    %c0_i32_3 = arith.constant 0 : i32
    %7 = arith.cmpi ne, %6, %c0_i32_3 : i32
    scf.if %7 {
      %cst_13 = arith.constant 0.000000e+00 : f32
      %17 = vector.broadcast %cst_13 : f32 to vector<512x128xf32>
      %c0_14 = arith.constant 0 : index
      %c0_15 = arith.constant 0 : index
      %18 = vector.load %arg8[%c0_14, %c0_15] : memref<512x128xf32, #tpu.memory_space<vmem>>, vector<512x128xf32>
      tpu.vector_store %arg8[%c0_14, %c0_15], %17 {strides = array<i32>} : memref<512x128xf32, #tpu.memory_space<vmem>>, vector<512x128xf32>,
    } else {
    }
    %c0 = arith.constant 0 : index
    %c0_4 = arith.constant 0 : index
    %8 = vector.load %arg8[%c0, %c0_4] : memref<512x128xf32, #tpu.memory_space<vmem>>, vector<512x128xf32>
    %c0_5 = arith.constant 0 : index
    %c0_6 = arith.constant 0 : index
    %9 = vector.load %arg3[%c0_5, %c0_6] : memref<512x128xbf16, #tpu.memory_space<vmem>>, vector<512x128xbf16>
    %c0_7 = arith.constant 0 : index
    %c0_8 = arith.constant 0 : index
    %10 = vector.load %arg4[%c0_7, %c0_8] : memref<128x128xbf16, #tpu.memory_space<vmem>>, vector<128x128xbf16>
    %cst = arith.constant dense<0.000000e+00> : vector<512x128xf32>
    %11 = tpu.matmul %9, %10, %cst {dimension_numbers = #tpu.dot_dimension_numbers<[1], [0], [0], [1], [0, 0, 1, 1], [], []>} : vector<512x128xbf16>, vector<128x128xbf16>, vector<512x128xf32> -> vector<512x128xf32>
    %12 = arith.addf %8, %11 : vector<512x128xf32>
    %c0_9 = arith.constant 0 : index
    %c0_10 = arith.constant 0 : index
    %13 = vector.load %arg8[%c0_9, %c0_10] : memref<512x128xf32, #tpu.memory_space<vmem>>, vector<512x128xf32>
    tpu.vector_store %arg8[%c0_9, %c0_10], %12 {strides = array<i32>} : memref<512x128xf32, #tpu.memory_space<vmem>>, vector<512x128xf32>,
    %c0_i32_11 = arith.constant 0 : i32
    %14 = arith.cmpi eq, %arg2, %c0_i32_11 : i32
    %15 = arith.extui %14 : i1 to i32
    %c0_i32_12 = arith.constant 0 : i32
    %16 = arith.cmpi ne, %15, %c0_i32_12 : i32
    scf.if %16 {
      %c0_13 = arith.constant 0 : index
      %c0_14 = arith.constant 0 : index
      %17 = vector.load %arg8[%c0_13, %c0_14] : memref<512x128xf32, #tpu.memory_space<vmem>>, vector<512x128xf32>
      %c0_15 = arith.constant 0 : index
      %c0_16 = arith.constant 0 : index
      %18 = vector.load %arg5[%c0_15, %c0_16] : memref<512x128xf32, #tpu.memory_space<vmem>>, vector<512x128xf32>
      tpu.vector_store %arg5[%c0_15, %c0_16], %17 {strides = array<i32>} : memref<512x128xf32, #tpu.memory_space<vmem>>, vector<512x128xf32>,
      %c0_17 = arith.constant 0 : index
      %c0_18 = arith.constant 0 : index
      %19 = vector.load %arg6[%c0_17, %c0_18] : memref<1x128xf32, #tpu.memory_space<vmem>>, vector<1x128xf32>
      %cst_19 = arith.constant dense<0.000000e+00> : vector<128xf32>
      %20 = vector.multi_reduction <add>, %17, %cst_19 [0] : vector<512x128xf32> to vector<128xf32>
      %21 = vector.shape_cast %20 : vector<128xf32> to vector<1x128xf32>
      %22 = arith.addf %19, %21 : vector<1x128xf32>
      %c0_20 = arith.constant 0 : index
      %c0_21 = arith.constant 0 : index
      %23 = vector.load %arg6[%c0_20, %c0_21] : memref<1x128xf32, #tpu.memory_space<vmem>>, vector<1x128xf32>
      tpu.vector_store %arg6[%c0_20, %c0_21], %22 {strides = array<i32>} : memref<1x128xf32, #tpu.memory_space<vmem>>, vector<1x128xf32>,
      %c0_22 = arith.constant 0 : index
      %c0_23 = arith.constant 0 : index
      %24 = vector.load %arg7[%c0_22, %c0_23] : memref<1x128xf32, #tpu.memory_space<vmem>>, vector<1x128xf32>
      %25 = arith.mulf %17, %17 : vector<512x128xf32>
      %cst_24 = arith.constant dense<0.000000e+00> : vector<128xf32>
      %26 = vector.multi_reduction <add>, %25, %cst_24 [0] : vector<512x128xf32> to vector<128xf32>
      %27 = vector.shape_cast %26 : vector<128xf32> to vector<1x128xf32>
      %28 = arith.addf %24, %27 : vector<1x128xf32>
      %c0_25 = arith.constant 0 : index
      %c0_26 = arith.constant 0 : index
      %29 = vector.load %arg7[%c0_25, %c0_26] : memref<1x128xf32, #tpu.memory_space<vmem>>, vector<1x128xf32>
      tpu.vector_store %arg7[%c0_25, %c0_26], %28 {strides = array<i32>} : memref<1x128xf32, #tpu.memory_space<vmem>>, vector<1x128xf32>,
    } else {
    }
    return
  }
  func.func @transform_0(%arg0: i32, %arg1: i32, %arg2: i32) -> (i32, i32) {
    %c0_i32 = arith.constant 0 : i32
    return %arg1, %arg2 : i32, i32
  }
  func.func @transform_1(%arg0: i32, %arg1: i32, %arg2: i32) -> (i32, i32) {
    %c0_i32 = arith.constant 0 : i32
    return %arg2, %arg0 : i32, i32
  }
  func.func @transform_2(%arg0: i32, %arg1: i32, %arg2: i32) -> (i32, i32) {
    %c0_i32 = arith.constant 0 : i32
    return %arg1, %arg0 : i32, i32
  }
  func.func @transform_3(%arg0: i32, %arg1: i32, %arg2: i32) -> (i32, i32) {
    %c0_i32 = arith.constant 0 : i32
    %c0_i32_0 = arith.constant 0 : i32
    return %c0_i32, %arg0 : i32, i32
  }
  func.func @transform_4(%arg0: i32, %arg1: i32, %arg2: i32) -> (i32, i32) {
    %c0_i32 = arith.constant 0 : i32
    %c0_i32_0 = arith.constant 0 : i32
    return %c0_i32, %arg0 : i32, i32
  }
}

</mosaic_0001>

<bundles_post_ra>
// kernel: tpu_custom_call.1
= control target key start
LH: loop header
LB: loop body
LE: loop exit
PB: predicated region body
PF: predicated region fallthrough
CT: control target
= control target key end

     0   :  { %10 = vsyncpa [#allocation4], 0  ;;  %s1881_s0 = inlined_call_operand.hbm [shape: bf16[512,128], index: 0, kind: input, shape index: {}]   ;;  %s1882_s1 = inlined_call_operand.hbm [shape: bf16[128,128], index: 1, kind: input, shape index: {}]   ;;  %s1883_s2 = inlined_call_operand.hbm [shape: f32[512,128], index: 2, kind: output, shape index: {0}]   ;;  %s1884_s3 = inlined_call_operand.hbm [shape: f32[1,128], index: 3, kind: output, shape index: {1}]   ;;  %s1885_s4 = inlined_call_operand.hbm [shape: f32[1,128], index: 4, kind: output, shape index: {2}]  }
   0x1   :  { %11 = vsyncpa [#allocation7], 0 }
   0x2   :  { %12 = vsyncpa [#allocation5], 0 }
   0x3   :  { %13 = vsyncpa [#allocation10], 0  ;;  %s1639_s15 = smov [#allocation3]  }
   0x4   :  { %s19_s16 = sshll.u32 %s1639_s15, 4  ;;  %s20_s16 = int_to_ptr.vmem [resolvable:$true] %s19_s16 }
   0x5   :  { %s1539_s17 = scalar_lea.vmem %s20_s16, 4096  ;;  %p1544_p1 = scmp.lt.s32.totalorder %s20_s16, %s20_s16 }
   0x6   :  { %p1540_p0 = scmp.ne.s32.totalorder %s20_s16, %s1539_s17  ;;  %p1545_p2 = scmp.lt.s32.totalorder %s1539_s17, %s1539_s17 }
   0x8   :  { %p1546_p3 = por %p1545_p2, %p1544_p1 }
   0xa   :  { %p1547_p4 = pnand %p1546_p3, %p1540_p0 }
   0xc   :  { %1550 = shalt.err (!%p1547_p4)
}
   0xd   :  { %s1640_s18 = smov 64   ;;  %s1641_s19 = smov 4  }
   0xe   :  { %25 = dma.hbm_to_vmem [thread:$0]  %s1881_s0, 4096, %s20_s16, [#allocation4], %s1640_s18, %s1640_s18, %s1641_s19  }
   0xf   :  { %s1642_s22 = smov [#allocation6]  }
  0x10   :  { %s31_s23 = sshll.u32 %s1642_s22, 4  ;;  %s32_s23 = int_to_ptr.vmem [resolvable:$true] %s31_s23 }
  0x11   :  { %s1559_s24 = scalar_lea.vmem %s32_s23, 1024  ;;  %p1564_p6 = scmp.lt.s32.totalorder %s32_s23, %s32_s23 }
  0x12   :  { %p1560_p5 = scmp.ne.s32.totalorder %s32_s23, %s1559_s24  ;;  %p1565_p7 = scmp.lt.s32.totalorder %s1559_s24, %s1559_s24 }
  0x14   :  { %p1566_p8 = por %p1565_p7, %p1564_p6 }
  0x16   :  { %p1567_p9 = pnand %p1566_p8, %p1560_p5 }
  0x18   :  { %1570 = shalt.err (!%p1567_p9)
}
  0x19   :  { %37 = dma.hbm_to_vmem [thread:$0]  %s1882_s1, 1024, %s32_s23, [#allocation7], %s1640_s18, %s1640_s18, %s1641_s19  }
  0x1a   :  { %1631 = dma.done.wait [#allocation4], 4096  }
  0x1b   :  { %1632 = vsyncadd [#allocation4], 4294963200 }
  0x1c   :  { %1633 = dma.done.wait [#allocation7], 1024  }
  0x1d   :  { %1634 = vsyncadd [#allocation7], 4294966272  ;;  %v1491_v0 = vld [vmem:[#allocation6 + $0x38] sm:$0xff]   ;;  %v1492_v1 = vld [vmem:[#allocation6 + $0x30] sm:$0xff]   ;;  %v1643_v56 = vmov 0.0   ;;  %s1644_s0 = smov [#allocation8]  }
  0x1e   :  { %1385 = vmatprep.subr.bf16.mxu0 %v1491_v0  ;;  %1465 = vmatprep.subr.bf16.mxu1 %v1491_v0  ;;  %v1493_v2 = vld [vmem:[#allocation6 + $0x28] sm:$0xff]   ;;  %v1494_v3 = vld [vmem:[#allocation6 + $0x20] sm:$0xff]   ;;  %v1495_v5 = vld [vmem:[#allocation6 + $0x18] sm:$0xff]   ;;  %51 = vst [vmem:[#allocation9] sm:$0x1] %v1643_v56  ;;  %s1265_s1 = sshll.u32 %s1644_s0, 4  ;;  %s1266_s1 = int_to_ptr.vmem [resolvable:$true] %s1265_s1 }
  0x1f   :  { %1386 = vmatpush3.bf16.msra.mxu0 %v1491_v0  ;;  %1473 = vmatpush3.bf16.msra.mxu1 %v1491_v0  ;;  %v1499_v4 = vld [vmem:[#allocation3] sm:$0xff]   ;;  %v1496_v6 = vld [vmem:[#allocation6 + $0x10] sm:$0xff]   ;;  %v1497_v7 = vld [vmem:[#allocation6 + $0x8] sm:$0xff]   ;;  %52 = vst [vmem:[#allocation11] sm:$0x1] %v1643_v56  ;;  %s1571_s27 = scalar_lea.vmem %s1266_s1, 8192  ;;  %p1576_p11 = scmp.lt.s32.totalorder %s1266_s1, %s1266_s1 }
  0x20   :  { %1387 = vmatprep.subr.bf16.mxu0 %v1492_v1  ;;  %1466 = vmatprep.subr.bf16.mxu1 %v1492_v1  ;;  %v1498_v8 = vld [vmem:[#allocation6] sm:$0xff]   ;;  %v1500_v10 = vld [vmem:[#allocation3 + $0x8] sm:$0xff]   ;;  %v1501_v11 = vld [vmem:[#allocation3 + $0x10] sm:$0xff]   ;;  %p1572_p10 = scmp.ne.s32.totalorder %s1266_s1, %s1571_s27  ;;  %p1577_p12 = scmp.lt.s32.totalorder %s1571_s27, %s1571_s27 }
  0x21   :  { %1401 = vmatprep.mubr.bf16.mxu0 %v1499_v4  ;;  %v1515_v9 = vld [vmem:[#allocation3 + $0x80] sm:$0xff]   ;;  %v1516_v12 = vld [vmem:[#allocation3 + $0x88] sm:$0xff]   ;;  %v1517_v13 = vld [vmem:[#allocation3 + $0x90] sm:$0xff]  }
  0x22   :  { %1433 = vmatprep.mubr.bf16.mxu1 %v1515_v9  ;;  %v1502_v14 = vld [vmem:[#allocation3 + $0x18] sm:$0xff]   ;;  %v1503_v15 = vld [vmem:[#allocation3 + $0x20] sm:$0xff]   ;;  %v1504_v18 = vld [vmem:[#allocation3 + $0x28] sm:$0xff]   ;;  %p1578_p13 = por %p1577_p12, %p1576_p11 }
  0x23   :  { %1388 = vmatpush3.bf16.msra.mxu0 %v1492_v1  ;;  %1474 = vmatpush3.bf16.msra.mxu1 %v1492_v1  ;;  %v1518_v16 = vld [vmem:[#allocation3 + $0x98] sm:$0xff]   ;;  %v1519_v17 = vld [vmem:[#allocation3 + $0xa0] sm:$0xff]   ;;  %v1520_v19 = vld [vmem:[#allocation3 + $0xa8] sm:$0xff]  }
  0x24   :  { %1389 = vmatprep.subr.bf16.mxu0 %v1493_v2  ;;  %1467 = vmatprep.subr.bf16.mxu1 %v1493_v2  ;;  %v1505_v20 = vld [vmem:[#allocation3 + $0x30] sm:$0xff]   ;;  %v1506_v22 = vld [vmem:[#allocation3 + $0x38] sm:$0xff]   ;;  %v1507_v24 = vld [vmem:[#allocation3 + $0x40] sm:$0xff]   ;;  %p1579_p0 = pnand %p1578_p13, %p1572_p10 }
  0x25   :  { %v1521_v21 = vld [vmem:[#allocation3 + $0xb0] sm:$0xff]   ;;  %v1522_v23 = vld [vmem:[#allocation3 + $0xb8] sm:$0xff]   ;;  %v1523_v25 = vld [vmem:[#allocation3 + $0xc0] sm:$0xff]  }
  0x26   :  { %v1508_v26 = vld [vmem:[#allocation3 + $0x48] sm:$0xff]   ;;  %v1509_v28 = vld [vmem:[#allocation3 + $0x50] sm:$0xff]   ;;  %v1510_v30 = vld [vmem:[#allocation3 + $0x58] sm:$0xff]  }
  0x27   :  { %1390 = vmatpush3.bf16.msra.mxu0 %v1493_v2  ;;  %1475 = vmatpush3.bf16.msra.mxu1 %v1493_v2  ;;  %v1524_v27 = vld [vmem:[#allocation3 + $0xc8] sm:$0xff]   ;;  %v1525_v29 = vld [vmem:[#allocation3 + $0xd0] sm:$0xff]   ;;  %v1526_v31 = vld [vmem:[#allocation3 + $0xd8] sm:$0xff]  }
  0x28   :  { %1391 = vmatprep.subr.bf16.mxu0 %v1494_v3  ;;  %1468 = vmatprep.subr.bf16.mxu1 %v1494_v3  ;;  %v1511_v32 = vld [vmem:[#allocation3 + $0x60] sm:$0xff]   ;;  %v1512_v34 = vld [vmem:[#allocation3 + $0x68] sm:$0xff]   ;;  %v1513_v36 = vld [vmem:[#allocation3 + $0x70] sm:$0xff]  }
  0x29   :  { %v1527_v33 = vld [vmem:[#allocation3 + $0xe0] sm:$0xff]   ;;  %v1528_v35 = vld [vmem:[#allocation3 + $0xe8] sm:$0xff]   ;;  %v1529_v37 = vld [vmem:[#allocation3 + $0xf0] sm:$0xff]  }
  0x2a   :  { %v1514_v38 = vld [vmem:[#allocation3 + $0x78] sm:$0xff]  }
  0x2b   :  { %1392 = vmatpush3.bf16.msra.mxu0 %v1494_v3  ;;  %1476 = vmatpush3.bf16.msra.mxu1 %v1494_v3  ;;  %v1530_v39 = vld [vmem:[#allocation3 + $0xf8] sm:$0xff]  }
  0x2c   :  { %1393 = vmatprep.subr.bf16.mxu0 %v1495_v5  ;;  %1469 = vmatprep.subr.bf16.mxu1 %v1495_v5 }
  0x2f   :  { %1394 = vmatpush3.bf16.msra.mxu0 %v1495_v5  ;;  %1477 = vmatpush3.bf16.msra.mxu1 %v1495_v5 }
  0x30   :  { %1395 = vmatprep.subr.bf16.mxu0 %v1496_v6  ;;  %1470 = vmatprep.subr.bf16.mxu1 %v1496_v6 }
  0x33   :  { %1396 = vmatpush3.bf16.msra.mxu0 %v1496_v6  ;;  %1478 = vmatpush3.bf16.msra.mxu1 %v1496_v6 }
  0x34   :  { %1397 = vmatprep.subr.bf16.mxu0 %v1497_v7  ;;  %1471 = vmatprep.subr.bf16.mxu1 %v1497_v7 }
  0x37   :  { %1398 = vmatpush3.bf16.msra.mxu0 %v1497_v7  ;;  %1479 = vmatpush3.bf16.msra.mxu1 %v1497_v7 }
  0x38   :  { %1399 = vmatprep.subr.bf16.mxu0 %v1498_v8  ;;  %1472 = vmatprep.subr.bf16.mxu1 %v1498_v8 }
  0x3b   :  { %1400 = vmatpush3.bf16.msra.mxu0 %v1498_v8  ;;  %1480 = vmatpush3.bf16.msra.mxu1 %v1498_v8 }
  0x3e   :  { %1402 = vmatmul.mubr.bf16.vlgmr.msra.gmra.mxu0 %v1500_v10  ;;  %1434 = vmatmul.mubr.bf16.vlgmr.msra.gmra.mxu1 %v1516_v12 }
  0x3f   :  { %1405 = vmatprep.mubr.bf16.mxu0 %v1501_v11  ;;  %1437 = vmatprep.mubr.bf16.mxu1 %v1517_v13 }
  0x46   :  { %1406 = vmatmul.mubr.bf16.gmra.mxu0 %v1502_v14  ;;  %1438 = vmatmul.mubr.bf16.gmra.mxu1 %v1518_v16 }
  0x47   :  { %1409 = vmatprep.mubr.bf16.mxu0 %v1503_v15  ;;  %1441 = vmatprep.mubr.bf16.mxu1 %v1519_v17 }
  0x4e   :  { %1410 = vmatmul.mubr.bf16.gmra.mxu0 %v1504_v18  ;;  %1442 = vmatmul.mubr.bf16.gmra.mxu1 %v1520_v19 }
  0x4f   :  { %1413 = vmatprep.mubr.bf16.mxu0 %v1505_v20  ;;  %1445 = vmatprep.mubr.bf16.mxu1 %v1521_v21 }
  0x56   :  { %1414 = vmatmul.mubr.bf16.gmra.mxu0 %v1506_v22  ;;  %1446 = vmatmul.mubr.bf16.gmra.mxu1 %v1522_v23 }
  0x57   :  { %1417 = vmatprep.mubr.bf16.mxu0 %v1507_v24  ;;  %1449 = vmatprep.mubr.bf16.mxu1 %v1523_v25 }
  0x5e   :  { %1418 = vmatmul.mubr.bf16.gmra.mxu0 %v1508_v26  ;;  %1450 = vmatmul.mubr.bf16.gmra.mxu1 %v1524_v27 }
  0x5f   :  { %1421 = vmatprep.mubr.bf16.mxu0 %v1509_v28  ;;  %1453 = vmatprep.mubr.bf16.mxu1 %v1525_v29 }
  0x66   :  { %1422 = vmatmul.mubr.bf16.gmra.mxu0 %v1510_v30  ;;  %1454 = vmatmul.mubr.bf16.gmra.mxu1 %v1526_v31 }
  0x67   :  { %1425 = vmatprep.mubr.bf16.mxu0 %v1511_v32  ;;  %1457 = vmatprep.mubr.bf16.mxu1 %v1527_v33 }
  0x6e   :  { %1426 = vmatmul.mubr.bf16.gmra.mxu0 %v1512_v34  ;;  %1458 = vmatmul.mubr.bf16.gmra.mxu1 %v1528_v35 }
  0x6f   :  { %1429 = vmatprep.mubr.bf16.mxu0 %v1513_v36  ;;  %1461 = vmatprep.mubr.bf16.mxu1 %v1529_v37 }
  0x76   :  { %1430 = vmatmul.mubr.bf16.gmra.mxu0 %v1514_v38  ;;  %1462 = vmatmul.mubr.bf16.gmra.mxu1 %v1530_v39 }
  0xfe   :  { %v1403_v40 = vpop.f32.mrf.mxu0  ;;  %v1680_v41 = vpop.f32.mrf.mxu1 }
  0xff   :  { %990 = vst [vmem:[#allocation8 + $0x10] sm:$0xff] %v1403_v40  ;;  %1022 = vst [vmem:[#allocation8 + $0x110] sm:$0xff] %v1680_v41  ;;  %v1127_v53 = vmul.f32 %v1403_v40, %v1403_v40 }
 0x100   :  { %v538_v42 = vpop.f32.mrf.mxu0  ;;  %v1683_v43 = vpop.f32.mrf.mxu1 }
 0x101   :  { %988 = vst [vmem:[#allocation8] sm:$0xff] %v538_v42  ;;  %1020 = vst [vmem:[#allocation8 + $0x100] sm:$0xff] %v1683_v43  ;;  %v1125_v48 = vmul.f32 %v538_v42, %v538_v42 }
 0x102   :  { %v1404_v44 = vpop.f32.mrf.mxu0  ;;  %v1686_v45 = vpop.f32.mrf.mxu1 }
 0x103   :  { %991 = vst [vmem:[#allocation8 + $0x18] sm:$0xff] %v1404_v44  ;;  %1023 = vst [vmem:[#allocation8 + $0x118] sm:$0xff] %v1686_v45  ;;  %v1128_v59 = vmul.f32 %v1404_v44, %v1404_v44 }
 0x104   :  { %v541_v46 = vpop.f32.mrf.mxu0  ;;  %v1689_v47 = vpop.f32.mrf.mxu1 }
 0x105   :  { %989 = vst [vmem:[#allocation8 + $0x8] sm:$0xff] %v541_v46  ;;  %v1053_v49 = vadd.f32 %v541_v46, %v538_v42  ;;  %v1126_v50 = vmul.f32 %v541_v46, %v541_v46  ;;  %1021 = vst [vmem:[#allocation8 + $0x108] sm:$0xff] %v1689_v47 }
 0x106   :  { %v1407_v51 = vpop.f32.mrf.mxu0  ;;  %v1692_v52 = vpop.f32.mrf.mxu1 }
 0x107   :  { %v1054_v54 = vadd.f32 %v1403_v40, %v1053_v49  ;;  %v1189_v55 = vadd.f32 %v1126_v50, %v1125_v48  ;;  %994 = vst [vmem:[#allocation8 + $0x30] sm:$0xff] %v1407_v51  ;;  %1026 = vst [vmem:[#allocation8 + $0x130] sm:$0xff] %v1692_v52  ;;  %v1131_v10 = vmul.f32 %v1407_v51, %v1407_v51 }
 0x108   :  { %v554_v57 = vpop.f32.mrf.mxu0  ;;  %v1695_v58 = vpop.f32.mrf.mxu1 }
 0x109   :  { %v1190_v60 = vadd.f32 %v1189_v55, %v1127_v53  ;;  %992 = vst [vmem:[#allocation8 + $0x20] sm:$0xff] %v554_v57  ;;  %v1055_v61 = vadd.f32 %v1404_v44, %v1054_v54  ;;  %1024 = vst [vmem:[#allocation8 + $0x120] sm:$0xff] %v1695_v58  ;;  %v1129_v1 = vmul.f32 %v554_v57, %v554_v57 }
 0x10a   :  { %v1408_v62 = vpop.f32.mrf.mxu0  ;;  %v1698_v63 = vpop.f32.mrf.mxu1 }
 0x10b   :  { %v1056_v0 = vadd.f32 %v1055_v61, %v554_v57  ;;  %v1191_v2 = vadd.f32 %v1190_v60, %v1128_v59  ;;  %995 = vst [vmem:[#allocation8 + $0x38] sm:$0xff] %v1408_v62  ;;  %1027 = vst [vmem:[#allocation8 + $0x138] sm:$0xff] %v1698_v63  ;;  %v1132_v15 = vmul.f32 %v1408_v62, %v1408_v62 }
 0x10c   :  { %v557_v3 = vpop.f32.mrf.mxu0  ;;  %v1701_v4 = vpop.f32.mrf.mxu1 }
 0x10d   :  { %v1192_v5 = vadd.f32 %v1191_v2, %v1129_v1  ;;  %993 = vst [vmem:[#allocation8 + $0x28] sm:$0xff] %v557_v3  ;;  %v1057_v6 = vadd.f32 %v1056_v0, %v557_v3  ;;  %v1130_v7 = vmul.f32 %v557_v3, %v557_v3  ;;  %1025 = vst [vmem:[#allocation8 + $0x128] sm:$0xff] %v1701_v4 }
 0x10e   :  { %v1411_v8 = vpop.f32.mrf.mxu0  ;;  %v1704_v9 = vpop.f32.mrf.mxu1 }
 0x10f   :  { %v1058_v11 = vadd.f32 %v1407_v51, %v1057_v6  ;;  %v1193_v12 = vadd.f32 %v1192_v5, %v1130_v7  ;;  %998 = vst [vmem:[#allocation8 + $0x50] sm:$0xff] %v1411_v8  ;;  %1030 = vst [vmem:[#allocation8 + $0x150] sm:$0xff] %v1704_v9  ;;  %v1135_v30 = vmul.f32 %v1411_v8, %v1411_v8 }
 0x110   :  { %v570_v13 = vpop.f32.mrf.mxu0  ;;  %v1707_v14 = vpop.f32.mrf.mxu1 }
 0x111   :  { %v1194_v16 = vadd.f32 %v1193_v12, %v1131_v10  ;;  %996 = vst [vmem:[#allocation8 + $0x40] sm:$0xff] %v570_v13  ;;  %v1059_v17 = vadd.f32 %v1408_v62, %v1058_v11  ;;  %1028 = vst [vmem:[#allocation8 + $0x140] sm:$0xff] %v1707_v14  ;;  %v1133_v21 = vmul.f32 %v570_v13, %v570_v13 }
 0x112   :  { %v1412_v18 = vpop.f32.mrf.mxu0  ;;  %v1710_v19 = vpop.f32.mrf.mxu1 }
 0x113   :  { %v1060_v20 = vadd.f32 %v1059_v17, %v570_v13  ;;  %v1195_v22 = vadd.f32 %v1194_v16, %v1132_v15  ;;  %999 = vst [vmem:[#allocation8 + $0x58] sm:$0xff] %v1412_v18  ;;  %1031 = vst [vmem:[#allocation8 + $0x158] sm:$0xff] %v1710_v19  ;;  %v1136_v35 = vmul.f32 %v1412_v18, %v1412_v18 }
 0x114   :  { %v573_v23 = vpop.f32.mrf.mxu0  ;;  %v1713_v24 = vpop.f32.mrf.mxu1 }
 0x115   :  { %v1196_v25 = vadd.f32 %v1195_v22, %v1133_v21  ;;  %997 = vst [vmem:[#allocation8 + $0x48] sm:$0xff] %v573_v23  ;;  %v1061_v26 = vadd.f32 %v1060_v20, %v573_v23  ;;  %v1134_v27 = vmul.f32 %v573_v23, %v573_v23  ;;  %1029 = vst [vmem:[#allocation8 + $0x148] sm:$0xff] %v1713_v24 }
 0x116   :  { %v1415_v28 = vpop.f32.mrf.mxu0  ;;  %v1716_v29 = vpop.f32.mrf.mxu1 }
 0x117   :  { %v1062_v31 = vadd.f32 %v1411_v8, %v1061_v26  ;;  %v1197_v32 = vadd.f32 %v1196_v25, %v1134_v27  ;;  %1002 = vst [vmem:[#allocation8 + $0x70] sm:$0xff] %v1415_v28  ;;  %1034 = vst [vmem:[#allocation8 + $0x170] sm:$0xff] %v1716_v29  ;;  %v1139_v55 = vmul.f32 %v1415_v28, %v1415_v28 }
 0x118   :  { %v586_v33 = vpop.f32.mrf.mxu0  ;;  %v1719_v34 = vpop.f32.mrf.mxu1 }
 0x119   :  { %v1198_v36 = vadd.f32 %v1197_v32, %v1135_v30  ;;  %1000 = vst [vmem:[#allocation8 + $0x60] sm:$0xff] %v586_v33  ;;  %v1063_v37 = vadd.f32 %v1412_v18, %v1062_v31  ;;  %1032 = vst [vmem:[#allocation8 + $0x160] sm:$0xff] %v1719_v34  ;;  %v1137_v42 = vmul.f32 %v586_v33, %v586_v33 }
 0x11a   :  { %v1416_v38 = vpop.f32.mrf.mxu0  ;;  %v1722_v39 = vpop.f32.mrf.mxu1 }
 0x11b   :  { %v1064_v40 = vadd.f32 %v1063_v37, %v586_v33  ;;  %v1199_v44 = vadd.f32 %v1198_v36, %v1136_v35  ;;  %1003 = vst [vmem:[#allocation8 + $0x78] sm:$0xff] %v1416_v38  ;;  %1035 = vst [vmem:[#allocation8 + $0x178] sm:$0xff] %v1722_v39  ;;  %v1140_v61 = vmul.f32 %v1416_v38, %v1416_v38 }
 0x11c   :  { %v589_v46 = vpop.f32.mrf.mxu0  ;;  %v1725_v48 = vpop.f32.mrf.mxu1 }
 0x11d   :  { %v1200_v49 = vadd.f32 %v1199_v44, %v1137_v42  ;;  %1001 = vst [vmem:[#allocation8 + $0x68] sm:$0xff] %v589_v46  ;;  %v1065_v50 = vadd.f32 %v1064_v40, %v589_v46  ;;  %v1138_v51 = vmul.f32 %v589_v46, %v589_v46  ;;  %1033 = vst [vmem:[#allocation8 + $0x168] sm:$0xff] %v1725_v48 }
 0x11e   :  { %v1419_v53 = vpop.f32.mrf.mxu0  ;;  %v1728_v54 = vpop.f32.mrf.mxu1 }
 0x11f   :  { %v1066_v56 = vadd.f32 %v1415_v28, %v1065_v50  ;;  %v1201_v57 = vadd.f32 %v1200_v49, %v1138_v51  ;;  %1006 = vst [vmem:[#allocation8 + $0x90] sm:$0xff] %v1419_v53  ;;  %1038 = vst [vmem:[#allocation8 + $0x190] sm:$0xff] %v1728_v54  ;;  %v1143_v16 = vmul.f32 %v1419_v53, %v1419_v53 }
 0x120   :  { %v602_v59 = vpop.f32.mrf.mxu0  ;;  %v1731_v60 = vpop.f32.mrf.mxu1 }
 0x121   :  { %v1202_v62 = vadd.f32 %v1201_v57, %v1139_v55  ;;  %1004 = vst [vmem:[#allocation8 + $0x80] sm:$0xff] %v602_v59  ;;  %v1067_v0 = vadd.f32 %v1416_v38, %v1066_v56  ;;  %1036 = vst [vmem:[#allocation8 + $0x180] sm:$0xff] %v1731_v60  ;;  %v1141_v5 = vmul.f32 %v602_v59, %v602_v59 }
 0x122   :  { %v1420_v1 = vpop.f32.mrf.mxu0  ;;  %v1734_v2 = vpop.f32.mrf.mxu1 }
 0x123   :  { %v1068_v3 = vadd.f32 %v1067_v0, %v602_v59  ;;  %v1203_v6 = vadd.f32 %v1202_v62, %v1140_v61  ;;  %1007 = vst [vmem:[#allocation8 + $0x98] sm:$0xff] %v1420_v1  ;;  %1039 = vst [vmem:[#allocation8 + $0x198] sm:$0xff] %v1734_v2  ;;  %v1144_v22 = vmul.f32 %v1420_v1, %v1420_v1 }
 0x124   :  { %v605_v7 = vpop.f32.mrf.mxu0  ;;  %v1737_v8 = vpop.f32.mrf.mxu1 }
 0x125   :  { %v1204_v10 = vadd.f32 %v1203_v6, %v1141_v5  ;;  %1005 = vst [vmem:[#allocation8 + $0x88] sm:$0xff] %v605_v7  ;;  %v1069_v11 = vadd.f32 %v1068_v3, %v605_v7  ;;  %v1142_v12 = vmul.f32 %v605_v7, %v605_v7  ;;  %1037 = vst [vmem:[#allocation8 + $0x188] sm:$0xff] %v1737_v8 }
 0x126   :  { %v1423_v13 = vpop.f32.mrf.mxu0  ;;  %v1740_v15 = vpop.f32.mrf.mxu1 }
 0x127   :  { %v1070_v17 = vadd.f32 %v1419_v53, %v1069_v11  ;;  %v1205_v18 = vadd.f32 %v1204_v10, %v1142_v12  ;;  %1010 = vst [vmem:[#allocation8 + $0xb0] sm:$0xff] %v1423_v13  ;;  %1042 = vst [vmem:[#allocation8 + $0x1b0] sm:$0xff] %v1740_v15  ;;  %v1147_v42 = vmul.f32 %v1423_v13, %v1423_v13 }
 0x128   :  { %v618_v20 = vpop.f32.mrf.mxu0  ;;  %v1743_v21 = vpop.f32.mrf.mxu1 }
 0x129   :  { %v1206_v23 = vadd.f32 %v1205_v18, %v1143_v16  ;;  %1008 = vst [vmem:[#allocation8 + $0xa0] sm:$0xff] %v618_v20  ;;  %v1071_v25 = vadd.f32 %v1420_v1, %v1070_v17  ;;  %1040 = vst [vmem:[#allocation8 + $0x1a0] sm:$0xff] %v1743_v21  ;;  %v1145_v30 = vmul.f32 %v618_v20, %v618_v20 }
 0x12a   :  { %v1424_v26 = vpop.f32.mrf.mxu0  ;;  %v1746_v27 = vpop.f32.mrf.mxu1 }
 0x12b   :  { %v1072_v28 = vadd.f32 %v1071_v25, %v618_v20  ;;  %v1207_v31 = vadd.f32 %v1206_v23, %v1144_v22  ;;  %1011 = vst [vmem:[#allocation8 + $0xb8] sm:$0xff] %v1424_v26  ;;  %1043 = vst [vmem:[#allocation8 + $0x1b8] sm:$0xff] %v1746_v27  ;;  %v1148_v51 = vmul.f32 %v1424_v26, %v1424_v26 }
 0x12c   :  { %v621_v32 = vpop.f32.mrf.mxu0  ;;  %v1749_v33 = vpop.f32.mrf.mxu1 }
 0x12d   :  { %v1208_v35 = vadd.f32 %v1207_v31, %v1145_v30  ;;  %1009 = vst [vmem:[#allocation8 + $0xa8] sm:$0xff] %v621_v32  ;;  %v1073_v36 = vadd.f32 %v1072_v28, %v621_v32  ;;  %v1146_v37 = vmul.f32 %v621_v32, %v621_v32  ;;  %1041 = vst [vmem:[#allocation8 + $0x1a8] sm:$0xff] %v1749_v33 }
 0x12e   :  { %v1427_v38 = vpop.f32.mrf.mxu0  ;;  %v1752_v40 = vpop.f32.mrf.mxu1 }
 0x12f   :  { %v1074_v44 = vadd.f32 %v1423_v13, %v1073_v36  ;;  %v1209_v46 = vadd.f32 %v1208_v35, %v1146_v37  ;;  %1014 = vst [vmem:[#allocation8 + $0xd0] sm:$0xff] %v1427_v38  ;;  %1046 = vst [vmem:[#allocation8 + $0x1d0] sm:$0xff] %v1752_v40  ;;  %v1151_v11 = vmul.f32 %v1427_v38, %v1427_v38 }
 0x130   :  { %v634_v49 = vpop.f32.mrf.mxu0  ;;  %v1755_v50 = vpop.f32.mrf.mxu1 }
 0x131   :  { %v1210_v53 = vadd.f32 %v1209_v46, %v1147_v42  ;;  %1012 = vst [vmem:[#allocation8 + $0xc0] sm:$0xff] %v634_v49  ;;  %v1075_v55 = vadd.f32 %v1424_v26, %v1074_v44  ;;  %1044 = vst [vmem:[#allocation8 + $0x1c0] sm:$0xff] %v1755_v50  ;;  %v1149_v61 = vmul.f32 %v634_v49, %v634_v49 }
 0x132   :  { %v1428_v56 = vpop.f32.mrf.mxu0  ;;  %v1758_v57 = vpop.f32.mrf.mxu1 }
 0x133   :  { %v1076_v59 = vadd.f32 %v1075_v55, %v634_v49  ;;  %v1211_v62 = vadd.f32 %v1210_v53, %v1148_v51  ;;  %1015 = vst [vmem:[#allocation8 + $0xd8] sm:$0xff] %v1428_v56  ;;  %1047 = vst [vmem:[#allocation8 + $0x1d8] sm:$0xff] %v1758_v57  ;;  %v1152_v18 = vmul.f32 %v1428_v56, %v1428_v56 }
 0x134   :  { %v637_v0 = vpop.f32.mrf.mxu0  ;;  %v1761_v1 = vpop.f32.mrf.mxu1 }
 0x135   :  { %v1212_v3 = vadd.f32 %v1211_v62, %v1149_v61  ;;  %1013 = vst [vmem:[#allocation8 + $0xc8] sm:$0xff] %v637_v0  ;;  %v1077_v5 = vadd.f32 %v1076_v59, %v637_v0  ;;  %v1150_v6 = vmul.f32 %v637_v0, %v637_v0  ;;  %1045 = vst [vmem:[#allocation8 + $0x1c8] sm:$0xff] %v1761_v1 }
 0x136   :  { %v1431_v7 = vpop.f32.mrf.mxu0  ;;  %v1764_v10 = vpop.f32.mrf.mxu1 }
 0x137   :  { %v1078_v12 = vadd.f32 %v1427_v38, %v1077_v5  ;;  %v1213_v13 = vadd.f32 %v1212_v3, %v1150_v6  ;;  %1018 = vst [vmem:[#allocation8 + $0xf0] sm:$0xff] %v1431_v7  ;;  %1050 = vst [vmem:[#allocation8 + $0x1f0] sm:$0xff] %v1764_v10 }
 0x138   :  { %v650_v16 = vpop.f32.mrf.mxu0  ;;  %v1767_v17 = vpop.f32.mrf.mxu1 }
 0x139   :  { %v1214_v20 = vadd.f32 %v1213_v13, %v1151_v11  ;;  %1016 = vst [vmem:[#allocation8 + $0xe0] sm:$0xff] %v650_v16  ;;  %v1079_v22 = vadd.f32 %v1428_v56, %v1078_v12  ;;  %1048 = vst [vmem:[#allocation8 + $0x1e0] sm:$0xff] %v1767_v17  ;;  %v1153_v28 = vmul.f32 %v650_v16, %v650_v16 }
 0x13a   :  { %v1432_v23 = vpop.f32.mrf.mxu0  ;;  %v1770_v25 = vpop.f32.mrf.mxu1 }
 0x13b   :  { %v1080_v26 = vadd.f32 %v1079_v22, %v650_v16  ;;  %v1215_v30 = vadd.f32 %v1214_v20, %v1152_v18  ;;  %1019 = vst [vmem:[#allocation8 + $0xf8] sm:$0xff] %v1432_v23  ;;  %1051 = vst [vmem:[#allocation8 + $0x1f8] sm:$0xff] %v1770_v25 }
 0x13c   :  { %v653_v31 = vpop.f32.mrf.mxu0  ;;  %v1773_v32 = vpop.f32.mrf.mxu1 }
 0x13d   :  { %v1216_v35 = vadd.f32 %v1215_v30, %v1153_v28  ;;  %1017 = vst [vmem:[#allocation8 + $0xe8] sm:$0xff] %v653_v31  ;;  %v1081_v36 = vadd.f32 %v1080_v26, %v653_v31  ;;  %v1154_v37 = vmul.f32 %v653_v31, %v653_v31  ;;  %1049 = vst [vmem:[#allocation8 + $0x1e8] sm:$0xff] %v1773_v32 }
 0x13e   :  { %1582 = shalt.err (!%p1579_p0)
}
 0x13f   :  { %s1645_s28 = smov 128   ;;  %s1646_s29 = smov 8   ;;  %v1155_v38 = vmul.f32 %v1431_v7, %v1431_v7  ;;  %v1082_v42 = vadd.f32 %v1431_v7, %v1081_v36  ;;  %v1217_v44 = vadd.f32 %v1216_v35, %v1154_v37  ;;  %v1156_v46 = vmul.f32 %v1432_v23, %v1432_v23 }
 0x140   :  { %1271 = dma.vmem_to_hbm [thread:$0]  %s1266_s1, 8192, %s1883_s2, [#allocation5], %s1645_s28, %s1645_s28, %s1646_s29   ;;  %v1157_v53 = vmul.f32 %v1683_v43, %v1683_v43  ;;  %v1158_v61 = vmul.f32 %v1689_v47, %v1689_v47  ;;  %v1159_v0 = vmul.f32 %v1680_v41, %v1680_v41  ;;  %v1160_v6 = vmul.f32 %v1686_v45, %v1686_v45 }
 0x141   :  { %v1083_v49 = vadd.f32 %v1432_v23, %v1082_v42  ;;  %v1218_v51 = vadd.f32 %v1217_v44, %v1155_v38  ;;  %v1161_v12 = vmul.f32 %v1695_v58, %v1695_v58  ;;  %v1162_v18 = vmul.f32 %v1701_v4, %v1701_v4  ;;  %s1647_s2 = smov [#allocation9]   ;;  %s1648_s7 = smov [#allocation11]  }
 0x142   :  { %v1165_v28 = vmul.f32 %v1707_v14, %v1707_v14  ;;  %v1166_v35 = vmul.f32 %v1713_v24, %v1713_v24  ;;  %v1169_v44 = vmul.f32 %v1719_v34, %v1719_v34  ;;  %s1278_s6 = sshll.u32 %s1647_s2, 4  ;;  %s1288_s8 = sshll.u32 %s1648_s7, 4  ;;  %s1279_s6 = int_to_ptr.vmem [resolvable:$true] %s1278_s6  ;;  %s1289_s8 = int_to_ptr.vmem [resolvable:$true] %s1288_s8 }
 0x143   :  { %v1219_v55 = vadd.f32 %v1218_v51, %v1156_v46  ;;  %v1084_v56 = vadd.f32 %v1083_v49, %v1683_v43  ;;  %v1170_v51 = vmul.f32 %v1725_v48, %v1725_v48  ;;  %s1591_s9 = scalar_lea.vmem %s1279_s6, 16  ;;  %s1595_s10 = scalar_lea.vmem %s1279_s6, 32 }
 0x144   :  { %p1592_p1 = scmp.ne.s32.totalorder %s1279_s6, %s1591_s9  ;;  %p1596_p2 = scmp.lt.s32.totalorder %s1279_s6, %s1279_s6 }
 0x145   :  { %v1085_v59 = vadd.f32 %v1084_v56, %v1689_v47  ;;  %v1220_v62 = vadd.f32 %v1219_v55, %v1157_v53  ;;  %p1597_p3 = scmp.lt.s32.totalorder %s1595_s10, %s1591_s9 }
 0x147   :  { %v1086_v3 = vadd.f32 %v1680_v41, %v1085_v59  ;;  %v1221_v5 = vadd.f32 %v1220_v62, %v1158_v61  ;;  %v1163_v41 = vmul.f32 %v1692_v52, %v1692_v52  ;;  %v1173_v61 = vmul.f32 %v1731_v60, %v1731_v60  ;;  %p1598_p4 = por %p1597_p3, %p1596_p2 }
 0x149   :  { %v1222_v7 = vadd.f32 %v1221_v5, %v1159_v0  ;;  %v1087_v11 = vadd.f32 %v1686_v45, %v1086_v3  ;;  %v1164_v45 = vmul.f32 %v1698_v63, %v1698_v63  ;;  %v1174_v3 = vmul.f32 %v1737_v8, %v1737_v8  ;;  %p1599_p5 = pnand %p1598_p4, %p1592_p1 }
 0x14b   :  { %v1088_v43 = vadd.f32 %v1087_v11, %v1695_v58  ;;  %v1223_v13 = vadd.f32 %v1222_v7, %v1160_v6 }
 0x14d   :  { %v1224_v47 = vadd.f32 %v1223_v13, %v1161_v12  ;;  %v1089_v16 = vadd.f32 %v1088_v43, %v1701_v4  ;;  %v1177_v43 = vmul.f32 %v1743_v21, %v1743_v21 }
 0x14f   :  { %v1090_v20 = vadd.f32 %v1692_v52, %v1089_v16  ;;  %v1225_v22 = vadd.f32 %v1224_v47, %v1162_v18  ;;  %v1167_v52 = vmul.f32 %v1704_v9, %v1704_v9  ;;  %v1178_v47 = vmul.f32 %v1749_v33, %v1749_v33 }
 0x151   :  { %v1226_v23 = vadd.f32 %v1225_v22, %v1163_v41  ;;  %v1091_v26 = vadd.f32 %v1698_v63, %v1090_v20  ;;  %v1168_v63 = vmul.f32 %v1710_v19, %v1710_v19  ;;  %v1181_v22 = vmul.f32 %v1755_v50, %v1755_v50 }
 0x153   :  { %v1092_v58 = vadd.f32 %v1091_v26, %v1707_v14  ;;  %v1227_v30 = vadd.f32 %v1226_v23, %v1164_v45  ;;  %v1182_v26 = vmul.f32 %v1761_v1, %v1761_v1 }
 0x155   :  { %v1228_v31 = vadd.f32 %v1227_v30, %v1165_v28  ;;  %v1093_v4 = vadd.f32 %v1092_v58, %v1713_v24 }
 0x157   :  { %v1094_v36 = vadd.f32 %v1704_v9, %v1093_v4  ;;  %v1229_v37 = vadd.f32 %v1228_v31, %v1166_v35  ;;  %v1171_v9 = vmul.f32 %v1716_v29, %v1716_v29  ;;  %v1185_v4 = vmul.f32 %v1767_v17, %v1767_v17 }
 0x159   :  { %v1230_v38 = vadd.f32 %v1229_v37, %v1167_v52  ;;  %v1095_v42 = vadd.f32 %v1710_v19, %v1094_v36  ;;  %v1172_v19 = vmul.f32 %v1722_v39, %v1722_v39  ;;  %v1186_v36 = vmul.f32 %v1773_v32, %v1773_v32 }
 0x15b   :  { %v1096_v14 = vadd.f32 %v1095_v42, %v1719_v34  ;;  %v1231_v46 = vadd.f32 %v1230_v38, %v1168_v63 }
 0x15d   :  { %v1232_v49 = vadd.f32 %v1231_v46, %v1169_v44  ;;  %v1097_v24 = vadd.f32 %v1096_v14, %v1725_v48 }
 0x15f   :  { %v1098_v53 = vadd.f32 %v1716_v29, %v1097_v24  ;;  %v1233_v55 = vadd.f32 %v1232_v49, %v1170_v51  ;;  %v1175_v29 = vmul.f32 %v1728_v54, %v1728_v54 }
 0x161   :  { %v1234_v56 = vadd.f32 %v1233_v55, %v1171_v9  ;;  %v1099_v59 = vadd.f32 %v1722_v39, %v1098_v53  ;;  %v1176_v39 = vmul.f32 %v1734_v2, %v1734_v2  ;;  %v1052_v55 = vld [vmem:[#allocation9] sm:$0x1] }
 0x163   :  { %v1100_v34 = vadd.f32 %v1099_v59, %v1731_v60  ;;  %v1235_v62 = vadd.f32 %v1234_v56, %v1172_v19  ;;  %v1124_v56 = vld [vmem:[#allocation11] sm:$0x1] }
 0x165   :  { %v1236_v0 = vadd.f32 %v1235_v62, %v1173_v61  ;;  %v1101_v48 = vadd.f32 %v1100_v34, %v1737_v8 }
 0x167   :  { %v1102_v5 = vadd.f32 %v1728_v54, %v1101_v48  ;;  %v1237_v6 = vadd.f32 %v1236_v0, %v1174_v3  ;;  %v1179_v54 = vmul.f32 %v1740_v15, %v1740_v15 }
 0x169   :  { %v1238_v7 = vadd.f32 %v1237_v6, %v1175_v29  ;;  %v1103_v11 = vadd.f32 %v1734_v2, %v1102_v5  ;;  %v1180_v2 = vmul.f32 %v1746_v27, %v1746_v27 }
 0x16b   :  { %v1104_v60 = vadd.f32 %v1103_v11, %v1743_v21  ;;  %v1239_v12 = vadd.f32 %v1238_v7, %v1176_v39 }
 0x16d   :  { %v1240_v13 = vadd.f32 %v1239_v12, %v1177_v43  ;;  %v1105_v8 = vadd.f32 %v1104_v60, %v1749_v33 }
 0x16f   :  { %v1106_v16 = vadd.f32 %v1740_v15, %v1105_v8  ;;  %v1241_v18 = vadd.f32 %v1240_v13, %v1178_v47  ;;  %v1183_v15 = vmul.f32 %v1752_v40, %v1752_v40 }
 0x171   :  { %v1242_v41 = vadd.f32 %v1241_v18, %v1179_v54  ;;  %v1107_v20 = vadd.f32 %v1746_v27, %v1106_v16  ;;  %v1184_v27 = vmul.f32 %v1758_v57, %v1758_v57 }
 0x173   :  { %v1108_v21 = vadd.f32 %v1107_v20, %v1755_v50  ;;  %v1243_v45 = vadd.f32 %v1242_v41, %v1180_v2 }
 0x175   :  { %v1244_v23 = vadd.f32 %v1243_v45, %v1181_v22  ;;  %v1109_v33 = vadd.f32 %v1108_v21, %v1761_v1 }
 0x177   :  { %v1110_v58 = vadd.f32 %v1752_v40, %v1109_v33  ;;  %v1245_v28 = vadd.f32 %v1244_v23, %v1182_v26  ;;  %v1187_v40 = vmul.f32 %v1764_v10, %v1764_v10 }
 0x179   :  { %v1246_v30 = vadd.f32 %v1245_v28, %v1183_v15  ;;  %v1111_v31 = vadd.f32 %v1758_v57, %v1110_v58  ;;  %v1188_v57 = vmul.f32 %v1770_v25, %v1770_v25 }
 0x17b   :  { %v1112_v50 = vadd.f32 %v1111_v31, %v1767_v17  ;;  %v1247_v35 = vadd.f32 %v1246_v30, %v1184_v27 }
 0x17d   :  { %v1248_v52 = vadd.f32 %v1247_v35, %v1185_v4  ;;  %v1113_v1 = vadd.f32 %v1112_v50, %v1773_v32 }
 0x17f   :  { %v1114_v37 = vadd.f32 %v1764_v10, %v1113_v1  ;;  %v1249_v63 = vadd.f32 %v1248_v52, %v1186_v36 }
 0x181   :  { %v1115_v38 = vadd.f32 %v1770_v25, %v1114_v37  ;;  %v1250_v42 = vadd.f32 %v1249_v63, %v1187_v40 }
 0x183   :  { %v1116_v17 = vrot.slane %v1115_v38, 4  ;;  %v1251_v14 = vadd.f32 %v1250_v42, %v1188_v57 }
 0x185   :  { %v1117_v44 = vadd.f32 %v1116_v17, %v1115_v38  ;;  %v1252_v46 = vrot.slane %v1251_v14, 4 }
 0x187   :  { %v1118_v49 = vrot.slane %v1117_v44, 2  ;;  %v1253_v24 = vadd.f32 %v1252_v46, %v1251_v14 }
 0x189   :  { %v1119_v51 = vadd.f32 %v1118_v49, %v1117_v44  ;;  %v1254_v32 = vrot.slane %v1253_v24, 2 }
 0x18b   :  { %v1255_v9 = vadd.f32 %v1254_v32, %v1253_v24  ;;  %v1120_v53 = vrot.slane %v1119_v51, 1 }
 0x18d   :  { %v1121_v10 = vadd.f32 %v1120_v53, %v1119_v51  ;;  %v1256_v19 = vrot.slane %v1255_v9, 1 }
 0x18f   :  { %v1122_v25 = vadd.f32 %v1121_v10, %v1052_v55  ;;  %v1257_v59 = vadd.f32 %v1256_v19, %v1255_v9 }
 0x191   :  { %1123 = vst [vmem:[#allocation9] sm:$0x1] %v1122_v25  ;;  %v1258_v34 = vadd.f32 %v1257_v59, %v1124_v56 }
 0x192   :  { %1602 = shalt.err (!%p1599_p5)
}
 0x193   :  { %1281 = dma.vmem_to_hbm [thread:$0]  %s1279_s6, 16, %s1884_s3, [#allocation10]   ;;  %1259 = vst [vmem:[#allocation11] sm:$0x1] %v1258_v34 }
 0x194   :  { %s1611_s13 = scalar_lea.vmem %s1289_s8, 16  ;;  %s1615_s14 = scalar_lea.vmem %s1289_s8, 32 }
 0x195   :  { %p1612_p6 = scmp.ne.s32.totalorder %s1289_s8, %s1611_s13  ;;  %p1616_p7 = scmp.lt.s32.totalorder %s1289_s8, %s1289_s8 }
 0x196   :  { %p1617_p8 = scmp.lt.s32.totalorder %s1615_s14, %s1611_s13 }
 0x198   :  { %p1618_p9 = por %p1617_p8, %p1616_p7 }
 0x19a   :  { %p1619_p10 = pnand %p1618_p9, %p1612_p6 }
 0x19c   :  { %1622 = shalt.err (!%p1619_p10)
}
 0x19d   :  { %1291 = dma.vmem_to_hbm [thread:$0]  %s1289_s8, 16, %s1885_s4, [#allocation10]  }
 0x19e   :  { %1635 = dma.done.wait [#allocation5], 8192  }
 0x19f   :  { %1636 = vsyncadd [#allocation5], 4294959104 }
 0x1a0   :  { %1637 = dma.done.wait [#allocation10], 32  }
 0x1a1   :  { %1638 = vsyncadd [#allocation10], 4294967264 }
 0x1a2   :  { %1301 = vsyncpa [#allocation4], 1 }
 0x1a3   :  { %1302 = vsyncpa [#allocation7], 1 }
 0x1a4   :  { %1303 = vsyncpa [#allocation5], 1 }
 0x1a5   :  { %1304 = vsyncpa [#allocation10], 1 }

</bundles_post_ra>
